<compile_context>
chip_gen: v5e
topology: v5e:2x2
jax: 0.10.0
libtpu: 0.0.40
codegen_flags: <defaults>
</compile_context>

<pallas_src>
import functools

import jax
import jax.numpy as jnp
from jax.experimental import pallas as pl
from jax.experimental.pallas import tpu as pltpu


def _tv2d_tile_kernel(x_ref, o_ref, *, inv_h, inv_v):
    """Per-tile partial loss. x_ref: (m_tile, H, W); o_ref: (1, 8, 128)."""
    x = x_ref[...].astype(jnp.float32)          # (m_tile, H, W)
    mt, height, width = x.shape

    # ---- horizontal term: sum |x[..., w] - x[..., w+1]| ----
    if width % 128 == 0:
        # Lane-dense fast path: one XLU roll gives every circular neighbour
        # pair on full 128-lane vregs; subtracting the single wrap pair
        # |x[:, 0] - x[:, W-1]| leaves exactly the W-1 valid diffs.  This is
        # independent of the roll direction convention.
        x2 = x.reshape(mt * height, width)
        rolled = pltpu.roll(x2, shift=1, axis=1)
        circ_sum = jnp.sum(jnp.abs(x2 - rolled))
        wrap_sum = jnp.sum(jnp.abs(x2[:, 0:1] - x2[:, width - 1:width]))
        h_sum = circ_sum - wrap_sum
    else:
        # W is not lane-aligned anyway; plain slicing is the simplest correct
        # form and the masked ops are negligible in this HBM-bound kernel.
        dh = jnp.abs(x[:, :, :-1] - x[:, :, 1:])            # (mt, H, W-1)
        # Reduce the leading image axis first (pure VPU adds), then one small
        # XLU reduction per tile.
        h_sum = jnp.sum(jnp.sum(dh, axis=0))

    # ---- vertical term: sum |x[:, h, :] - x[:, h+1, :]| ----
    dv = jnp.abs(x[:, :-1, :] - x[:, 1:, :])                # (mt, H-1, W)
    v_sum = jnp.sum(jnp.sum(dv, axis=0))

    # Scale by host-precomputed inverse element counts; summing the per-tile
    # contributions in the wrapper then yields the exact TV2d loss.
    contrib = h_sum * inv_h + v_sum * inv_v

    # Lane-dense (1, 8, 128) output block per grid step; wrapper reads [:, 0, 0].
    o_ref[...] = jnp.full(o_ref.shape, contrib, dtype=o_ref.dtype)


def _tv2d_partial(xm, m_tile, inv_h, inv_v):
    """Sum of per-tile TV contributions for xm (M, H, W) with M % m_tile == 0."""
    M, H, W = xm.shape
    assert M % m_tile == 0
    num_tiles = M // m_tile

    kernel = functools.partial(_tv2d_tile_kernel, inv_h=inv_h, inv_v=inv_v)

    partials = pl.pallas_call(
        kernel,
        out_shape=jax.ShapeDtypeStruct((num_tiles, 8, 128), jnp.float32),
        grid_spec=pltpu.PrefetchScalarGridSpec(
            num_scalar_prefetch=0,
            grid=(num_tiles,),
            # Block covers the full (H, W) image(s): last two dims equal the
            # array dims, so the (8, 128) tiling constraint is always met.
            in_specs=[pl.BlockSpec((m_tile, H, W), lambda i: (i, 0, 0))],
            # Each grid step owns its own output block -> no cross-step carry,
            # so the grid axis can be parallel (v7x megacore).
            out_specs=pl.BlockSpec((1, 8, 128), lambda i: (i, 0, 0)),
        ),
        compiler_params=pltpu.CompilerParams(
            dimension_semantics=("parallel",),
            vmem_limit_bytes=32 * 1024 * 1024,
        ),
    )(xm)
    return jnp.sum(partials[:, 0, 0])


def tv2d_loss(x, *, target_tile_bytes=2 * 1024 * 1024):
    """Pallas implementation of TV2dLoss.forward for a (B, C, H, W) input."""
    B, C, H, W = x.shape
    assert H >= 2 and W >= 2, "TV2dLoss needs at least 2 pixels per spatial dim"
    M = B * C
    xm = x.reshape(M, H, W)

    # Host-precomputed inverse element counts of the two difference tensors.
    inv_h = 1.0 / float(M * H * (W - 1))
    inv_v = 1.0 / float(M * (H - 1) * W)

    # Images per tile: aim for ~target_tile_bytes of input per grid step
    # (mem-bound => big tiles), while the f32 working set + double-buffered
    # input DMA stays well inside every chip's VMEM budget (limit 32 MiB).
    bytes_per_image = H * W * jnp.dtype(x.dtype).itemsize
    m_tile = int(max(1, min(M, target_tile_bytes // max(1, bytes_per_image))))

    # Exact split: a main part that divides m_tile plus a small remainder call.
    m_main = (M // m_tile) * m_tile
    loss = jnp.float32(0.0)
    if m_main > 0:
        loss = loss + _tv2d_partial(xm[:m_main], m_tile, inv_h, inv_v)
    if m_main < M:
        loss = loss + _tv2d_partial(xm[m_main:], M - m_main, inv_h, inv_v)
    return loss


def tv2d_loss_ref(x):
    return (jnp.mean(jnp.abs(x[:, :, :, :-1] - x[:, :, :, 1:]))
            + jnp.mean(jnp.abs(x[:, :, :-1, :] - x[:, :, 1:, :])))


if __name__ == "__main__":
    key = jax.random.PRNGKey(0)

    # Small image batch consistent with the module's 4-D (B, C, H, W) input.
    B, C, H, W = 2, 4, 16, 16
    x = jax.random.normal(key, (B, C, H, W), dtype=jnp.float32)

    loss = jax.block_until_ready(tv2d_loss(x))
    ref = jax.block_until_ready(tv2d_loss_ref(x))
    assert jnp.allclose(loss, ref, rtol=1e-5, atol=1e-6), (loss, ref)

    # Exercise the multi-tile grid and the ragged-remainder path
    # (B*C = 15 images, tiny tile target forces 3 main tiles + remainder of 3).
    x2 = jax.random.normal(jax.random.PRNGKey(1), (3, 5, 16, 16), dtype=jnp.float32)
    loss2 = jax.block_until_ready(tv2d_loss(x2, target_tile_bytes=4 * 1024))
    ref2 = jax.block_until_ready(tv2d_loss_ref(x2))
    assert jnp.allclose(loss2, ref2, rtol=1e-5, atol=1e-6), (loss2, ref2)

    # Exercise the lane-aligned (W % 128 == 0) roll fast path.
    x3 = jax.random.normal(jax.random.PRNGKey(2), (2, 2, 8, 128), dtype=jnp.float32)
    loss3 = jax.block_until_ready(tv2d_loss(x3))
    ref3 = jax.block_until_ready(tv2d_loss_ref(x3))
    assert jnp.allclose(loss3, ref3, rtol=1e-5, atol=1e-6), (loss3, ref3)

    print("KERNEL_OK")
</pallas_src>

<mosaic_0001>
module attributes {stable_mosaic.version = 11 : i64} {
  func.func @_tv2d_tile_kernel(%arg0: i32, %arg1: memref<8x16x16xf32, #tpu.memory_space<vmem>>, %arg2: memref<1x8x128xf32, #tpu.memory_space<vmem>>) attributes {dimension_semantics = [#tpu.dimension_semantics<parallel>], iteration_bounds = array<i64: 1>, scalar_prefetch = 0 : i64, scratch_operands = 0 : i64, tpu.core_type = #tpu.core_type<tc>, window_params = [{transform_indices = @transform_0, window_bounds = array<i64: 8, 16, 16>}, {transform_indices = @transform_1, window_bounds = array<i64: 1, 8, 128>}]} {
    %c0 = arith.constant 0 : index
    %c0_0 = arith.constant 0 : index
    %c0_1 = arith.constant 0 : index
    %0 = vector.load %arg1[%c0, %c0_0, %c0_1] : memref<8x16x16xf32, #tpu.memory_space<vmem>>, vector<8x16x16xf32>
    %1 = vector.extract_strided_slice %0 {offsets = [0, 0, 0], sizes = [8, 16, 15], strides = [1, 1, 1]} : vector<8x16x16xf32> to vector<8x16x15xf32>
    %2 = vector.extract_strided_slice %0 {offsets = [0, 0, 1], sizes = [8, 16, 15], strides = [1, 1, 1]} : vector<8x16x16xf32> to vector<8x16x15xf32>
    %3 = arith.subf %1, %2 : vector<8x16x15xf32>
    %4 = math.absf %3 : vector<8x16x15xf32>
    %cst = arith.constant dense<0.000000e+00> : vector<16x15xf32>
    %5 = vector.multi_reduction <add>, %4, %cst [0] : vector<8x16x15xf32> to vector<16x15xf32>
    %6 = vector.shape_cast %5 : vector<16x15xf32> to vector<1x16x15xf32>
    %cst_2 = arith.constant dense<0.000000e+00> : vector<1xf32>
    %7 = vector.multi_reduction <add>, %6, %cst_2 [1, 2] : vector<1x16x15xf32> to vector<1xf32>
    %8 = vector.shape_cast %7 : vector<1xf32> to vector<1x1x1xf32>
    %9 = vector.extract %8[0, 0, 0] : f32 from vector<1x1x1xf32>
    %10 = vector.extract_strided_slice %0 {offsets = [0, 0, 0], sizes = [8, 15, 16], strides = [1, 1, 1]} : vector<8x16x16xf32> to vector<8x15x16xf32>
    %11 = vector.extract_strided_slice %0 {offsets = [0, 1, 0], sizes = [8, 15, 16], strides = [1, 1, 1]} : vector<8x16x16xf32> to vector<8x15x16xf32>
    %12 = arith.subf %10, %11 : vector<8x15x16xf32>
    %13 = math.absf %12 : vector<8x15x16xf32>
    %cst_3 = arith.constant dense<0.000000e+00> : vector<15x16xf32>
    %14 = vector.multi_reduction <add>, %13, %cst_3 [0] : vector<8x15x16xf32> to vector<15x16xf32>
    %15 = vector.shape_cast %14 : vector<15x16xf32> to vector<1x15x16xf32>
    %cst_4 = arith.constant dense<0.000000e+00> : vector<1xf32>
    %16 = vector.multi_reduction <add>, %15, %cst_4 [1, 2] : vector<1x15x16xf32> to vector<1xf32>
    %17 = vector.shape_cast %16 : vector<1xf32> to vector<1x1x1xf32>
    %18 = vector.extract %17[0, 0, 0] : f32 from vector<1x1x1xf32>
    %cst_5 = arith.constant 5.2083336E-4 : f32
    %19 = arith.mulf %9, %cst_5 : f32
    %cst_6 = arith.constant 5.2083336E-4 : f32
    %20 = arith.mulf %18, %cst_6 : f32
    %21 = arith.addf %19, %20 : f32
    %22 = vector.broadcast %21 : f32 to vector<1x8x128xf32>
    %c0_7 = arith.constant 0 : index
    %c0_8 = arith.constant 0 : index
    %c0_9 = arith.constant 0 : index
    %23 = vector.load %arg2[%c0_7, %c0_8, %c0_9] : memref<1x8x128xf32, #tpu.memory_space<vmem>>, vector<1x8x128xf32>
    tpu.vector_store %arg2[%c0_7, %c0_8, %c0_9], %22 {strides = array<i32>} : memref<1x8x128xf32, #tpu.memory_space<vmem>>, vector<1x8x128xf32>,
    return
  }
  func.func @transform_0(%arg0: i32) -> (i32, i32, i32) {
    %c0_i32 = arith.constant 0 : i32
    %c0_i32_0 = arith.constant 0 : i32
    %c0_i32_1 = arith.constant 0 : i32
    return %arg0, %c0_i32, %c0_i32_0 : i32, i32, i32
  }
  func.func @transform_1(%arg0: i32) -> (i32, i32, i32) {
    %c0_i32 = arith.constant 0 : i32
    %c0_i32_0 = arith.constant 0 : i32
    %c0_i32_1 = arith.constant 0 : i32
    return %arg0, %c0_i32, %c0_i32_0 : i32, i32, i32
  }
}

</mosaic_0001>

<bundles_post_ra>
// kernel: tpu_custom_call.1
= control target key start
LH: loop header
LB: loop body
LE: loop exit
PB: predicated region body
PF: predicated region fallthrough
CT: control target
= control target key end

     0   :  { %6 = vsyncpa [#allocation3], 0  ;;  %s544_s0 = inlined_call_operand.hbm [shape: f32[8,16,16], index: 0, kind: input, shape index: {}]   ;;  %s545_s1 = inlined_call_operand.hbm [shape: f32[1,8,128], index: 1, kind: output, shape index: {}]  }
   0x1   :  { %7 = vsyncpa [#allocation4], 0  ;;  %s12_s8 = sshll.u32 %s544_s0, 4  ;;  %s380_s9 = smov [#allocation2]   ;;  %s13_s8 = int_to_ptr.hbm [resolvable:$true] %s12_s8 }
   0x2   :  { %s14_s10 = sshll.u32 %s380_s9, 4  ;;  %s381_s11 = smov 128   ;;  %s15_s10 = int_to_ptr.vmem [resolvable:$true] %s14_s10 }
   0x3   :  { %s382_s12 = smov 8  }
   0x4   :  { %20 = dma.hbm_to_vmem [thread:$0]  %s13_s8, 2048, %s15_s10, [#allocation3], %s381_s11, %s381_s11, %s382_s12  }
   0x5   :  { %376 = dma.done.wait [#allocation3], 2048  }
   0x6   :  { %377 = vsyncadd [#allocation3], 4294965248  ;;  %v398_v0 = vld [vmem:[#allocation2 + $0x10] sm:$0xff]  ;;  %v400_v1 = vld [vmem:[#allocation2] sm:$0xff]  ;;  %s383_s13 = smov 127   ;;  %vm180_vm0 = vcmask 1046528  }
   0x7   :  { %61 = vrot.lane.b32.xlu1 %v398_v0, %s383_s13  ;;  %57 = vrot.lane.b32.xlu0 %v400_v1, %s383_s13  ;;  %v404_v2 = vld [vmem:[#allocation2 + $0x20] sm:$0xff]  ;;  %v407_v3 = vld [vmem:[#allocation2 + $0x18] sm:$0xff]  ;;  %v409_v4 = vld [vmem:[#allocation2 + $0x8] sm:$0xff]  ;;  %v184_v17 = vrot.slane %v398_v0, 1  ;;  %v181_v19 = vrot.slane %v400_v1, 1  ;;  %vm269_vm1 = vcmask 129024  }
   0x8   :  { %65 = vrot.lane.b32.xlu2 %v404_v2, %s383_s13  ;;  %v411_v5 = vld [vmem:[#allocation2 + $0x28] sm:$0xff]  ;;  %v416_v6 = vld [vmem:[#allocation2 + $0x38] sm:$0xff]  ;;  %v418_v7 = vld [vmem:[#allocation2 + $0x30] sm:$0xff]  ;;  %v185_v16 = vrot.slane %v407_v3, 1  ;;  %v182_v18 = vrot.slane %v409_v4, 1  ;;  %v187_v27 = vrot.slane %v404_v2, 1 }
   0x9   :  { %v420_v8 = vld [vmem:[#allocation2 + $0x40] sm:$0xff]  ;;  %v425_v9 = vld [vmem:[#allocation2 + $0x50] sm:$0xff]  ;;  %v427_v10 = vld [vmem:[#allocation2 + $0x48] sm:$0xff]  ;;  %v191_v21 = vrot.slane %v416_v6, 1  ;;  %v190_v24 = vrot.slane %v418_v7, 1  ;;  %v188_v25 = vrot.slane %v411_v5, 1 }
   0xa   :  { %v429_v11 = vld [vmem:[#allocation2 + $0x58] sm:$0xff]  ;;  %v434_v12 = vld [vmem:[#allocation2 + $0x68] sm:$0xff]  ;;  %v436_v13 = vld [vmem:[#allocation2 + $0x60] sm:$0xff]  ;;  %v224_v20 = vsub.f32 %v407_v3, %v185_v16  ;;  %v186_v22 = vsel %vm180_vm0, %v184_v17, %v185_v16  ;;  %v222_v23 = vsub.f32 %v409_v4, %v182_v18  ;;  %v183_v26 = vsel %vm180_vm0, %v181_v19, %v182_v18  ;;  %s384_s14 = smov [#allocation5]   ;;  %s309_s21 = sshll.u32 %s545_s1, 4  ;;  %s310_s21 = int_to_ptr.hbm [resolvable:$true] %s309_s21 }
   0xb   :  { %v438_v14 = vld [vmem:[#allocation2 + $0x70] sm:$0xff]  ;;  %v443_v15 = vld [vmem:[#allocation2 + $0x78] sm:$0xff]  ;;  %v223_v29 = vsub.f32 %v398_v0, %v186_v22  ;;  %v194_v30 = vrot.slane %v427_v10, 1  ;;  %v193_v31 = vrot.slane %v420_v8, 1  ;;  %v221_v33 = vsub.f32 %v400_v1, %v183_v26  ;;  %s307_s15 = sshll.u32 %s384_s14, 4  ;;  %s308_s15 = int_to_ptr.vmem [resolvable:$true] %s307_s15 }
   0xc   :  { %v240_v28 = vand.u32 2147483647, %v224_v20  ;;  %v238_v32 = vand.u32 2147483647, %v222_v23  ;;  %v192_v34 = vsel %vm180_vm0, %v190_v24, %v191_v21  ;;  %v226_v35 = vsub.f32 %v411_v5, %v188_v25 }
   0xd   :  { %v189_v36 = vsel %vm180_vm0, %v187_v27, %v188_v25  ;;  %vm253_vm2 = vcmask 130048   ;;  %v228_v37 = vsub.f32 %v416_v6, %v191_v21  ;;  %v239_v39 = vand.u32 2147483647, %v223_v29 }
   0xe   :  { %v271_v38 = vsel %vm269_vm1, %v240_v28, 0.0  ;;  %v227_v40 = vsub.f32 %v418_v7, %v192_v34  ;;  %v195_v41 = vsel %vm180_vm0, %v193_v31, %v194_v30  ;;  %v270_v42 = vsel %vm269_vm1, %v238_v32, 0.0 }
   0xf   :  { %63 = vrot.lane.b32.xlu1 %v407_v3, %s383_s13  ;;  %59 = vrot.lane.b32.xlu0 %v409_v4, %s383_s13  ;;  %v237_v43 = vand.u32 2147483647, %v221_v33  ;;  %v242_v44 = vand.u32 2147483647, %v226_v35  ;;  %v225_v45 = vsub.f32 %v404_v2, %v189_v36  ;;  %v196_v47 = vrot.slane %v425_v9, 1 }
  0x10   :  { %67 = vrot.lane.b32.xlu2 %v411_v5, %s383_s13  ;;  %v230_v48 = vsub.f32 %v427_v10, %v194_v30  ;;  %v200_v49 = vrot.slane %v434_v12, 1  ;;  %v199_v50 = vrot.slane %v436_v13, 1  ;;  %v229_v51 = vsub.f32 %v420_v8, %v195_v41 }
  0x11   :  { %v255_v52 = vsel %vm253_vm2, %v239_v39, 0.0  ;;  %v272_v53 = vadd.f32 %v271_v38, %v270_v42  ;;  %v244_v54 = vand.u32 2147483647, %v228_v37  ;;  %v197_v55 = vrot.slane %v429_v11, 1 }
  0x12   :  { %v254_v56 = vsel %vm253_vm2, %v237_v43, 0.0  ;;  %v243_v57 = vand.u32 2147483647, %v227_v40  ;;  %v273_v58 = vsel %vm269_vm1, %v242_v44, 0.0  ;;  %v241_v59 = vand.u32 2147483647, %v225_v45 }
  0x13   :  { %v203_v60 = vrot.slane %v443_v15, 1  ;;  %v202_v61 = vrot.slane %v438_v14, 1  ;;  %v246_v62 = vand.u32 2147483647, %v230_v48  ;;  %v201_v63 = vsel %vm180_vm0, %v199_v50, %v200_v49 }
  0x14   :  { %v245_v16 = vand.u32 2147483647, %v229_v51  ;;  %v274_v17 = vadd.f32 %v273_v58, %v272_v53  ;;  %v198_v18 = vsel %vm180_vm0, %v196_v47, %v197_v55  ;;  %v232_v19 = vsub.f32 %v429_v11, %v197_v55 }
  0x15   :  { %v256_v20 = vadd.f32 %v255_v52, %v254_v56  ;;  %v275_v21 = vsel %vm269_vm1, %v244_v54, 0.0  ;;  %v259_v22 = vsel %vm253_vm2, %v243_v57, 0.0  ;;  %v257_v23 = vsel %vm253_vm2, %v241_v59, 0.0 }
  0x16   :  { %v233_v24 = vsub.f32 %v436_v13, %v201_v63  ;;  %v204_v25 = vsel %vm180_vm0, %v202_v61, %v203_v60  ;;  %v277_v27 = vsel %vm269_vm1, %v246_v62, 0.0  ;;  %v234_v28 = vsub.f32 %v434_v12, %v200_v49 }
  0x17   :  { %71 = vrot.lane.b32.xlu1 %v416_v6, %s383_s13  ;;  %69 = vrot.lane.b32.xlu0 %v418_v7, %s383_s13  ;;  %v258_v26 = vadd.f32 %v257_v23, %v256_v20  ;;  %v261_v29 = vsel %vm253_vm2, %v245_v16, 0.0  ;;  %v231_v31 = vsub.f32 %v425_v9, %v198_v18  ;;  %v248_v32 = vand.u32 2147483647, %v232_v19 }
  0x18   :  { %73 = vrot.lane.b32.xlu2 %v420_v8, %s383_s13  ;;  %v276_v36 = vadd.f32 %v275_v21, %v274_v17  ;;  %v235_v37 = vsub.f32 %v438_v14, %v204_v25  ;;  %v249_v39 = vand.u32 2147483647, %v233_v24  ;;  %v236_v40 = vsub.f32 %v443_v15, %v203_v60 }
  0x19   :  { %v260_v35 = vadd.f32 %v259_v22, %v258_v26  ;;  %v247_v38 = vand.u32 2147483647, %v231_v31  ;;  %v250_v43 = vand.u32 2147483647, %v234_v28  ;;  %v279_v47 = vsel %vm269_vm1, %v248_v32, 0.0 }
  0x1a   :  { %v278_v42 = vadd.f32 %v277_v27, %v276_v36  ;;  %v251_v48 = vand.u32 2147483647, %v235_v37  ;;  %v252_v49 = vand.u32 2147483647, %v236_v40  ;;  %v265_v50 = vsel %vm253_vm2, %v249_v39, 0.0 }
  0x1b   :  { %v262_v41 = vadd.f32 %v261_v29, %v260_v35  ;;  %v263_v44 = vsel %vm253_vm2, %v247_v38, 0.0  ;;  %v281_v54 = vsel %vm269_vm1, %v250_v43, 0.0  ;;  %vm137_vm3 = vcmask 121856  }
  0x1c   :  { %v280_v51 = vadd.f32 %v279_v47, %v278_v42  ;;  %v267_v53 = vsel %vm253_vm2, %v251_v48, 0.0  ;;  %v283_v58 = vsel %vm269_vm1, %v252_v49, 0.0 }
  0x1d   :  { %v264_v45 = vadd.f32 %v263_v44, %v262_v41 }
  0x1e   :  { %v282_v57 = vadd.f32 %v281_v54, %v280_v51 }
  0x1f   :  { %77 = vrot.lane.b32.xlu1 %v425_v9, %s383_s13  ;;  %75 = vrot.lane.b32.xlu0 %v427_v10, %s383_s13  ;;  %v266_v52 = vadd.f32 %v265_v50, %v264_v45 }
  0x20   :  { %79 = vrot.lane.b32.xlu2 %v429_v11, %s383_s13  ;;  %v284_v61 = vadd.f32 %v283_v58, %v282_v57 }
  0x21   :  { %v268_v59 = vadd.f32 %v267_v53, %v266_v52 }
  0x22   :  { %v286_v63 = vsel %vm269_vm1, %v284_v61, 0.0 }
  0x23   :  { %v285_v62 = vsel %vm253_vm2, %v268_v59, 0.0 }
  0x24   :  { %v287_v16 = vadd.f32 %v286_v63, %v285_v62 }
  0x27   :  { %83 = vrot.lane.b32.xlu1 %v434_v12, %s383_s13  ;;  %81 = vrot.lane.b32.xlu0 %v436_v13, %s383_s13 }
  0x28   :  { %85 = vrot.lane.b32.xlu2 %v438_v14, %s383_s13 }
  0x2f   :  { %87 = vrot.lane.b32.xlu0 %v443_v15, %s383_s13 }
  0x51   :  { %288 = vadd.xlane.f32.xlu2 %v287_v16 }
  0x62   :  { %v471_v46 = vpop.permute.xlu2 %65 }
  0x63   :  { %v109_v21 = vsub.f32 %v404_v2, %v471_v46 }
  0x65   :  { %v125_v28 = vand.u32 2147483647, %v109_v21 }
  0x67   :  { %v141_v35 = vsel %vm137_vm3, %v125_v28, 0.0 }
  0x6a   :  { %v68_v30 = vpop.permute.xlu2 %67 }
  0x72   :  { %v74_v60 = vpop.permute.xlu2 %73 }
  0x73   :  { %v113_v2 = vsub.f32 %v420_v8, %v74_v60 }
  0x75   :  { %v129_v38 = vand.u32 2147483647, %v113_v2 }
  0x77   :  { %v145_v48 = vsel %vm137_vm3, %v129_v38, 0.0 }
  0x79   :  { %v62_v33 = vpop.permute.xlu1 %61  ;;  %v58_v34 = vpop.permute.xlu0 %57 }
  0x7a   :  { %v107_v17 = vsub.f32 %v398_v0, %v62_v33  ;;  %v105_v18 = vsub.f32 %v400_v1, %v58_v34  ;;  %v80_v26 = vpop.permute.xlu2 %79  ;;  %v110_v0 = vsub.f32 %v411_v5, %v68_v30 }
  0x7b   :  { %v116_v45 = vsub.f32 %v429_v11, %v80_v26 }
  0x7c   :  { %v123_v22 = vand.u32 2147483647, %v107_v17  ;;  %v121_v23 = vand.u32 2147483647, %v105_v18 }
  0x7e   :  { %v139_v1 = vsel %vm137_vm3, %v123_v22, 0.0  ;;  %v138_v29 = vsel %vm137_vm3, %v121_v23, 0.0 }
  0x7f   :  { %v140_v34 = vadd.f32 %v139_v1, %v138_v29 }
  0x81   :  { %v64_v55 = vpop.permute.xlu1 %63  ;;  %v60_v56 = vpop.permute.xlu0 %59  ;;  %v142_v40 = vadd.f32 %v141_v35, %v140_v34 }
  0x82   :  { %v108_v24 = vsub.f32 %v407_v3, %v64_v55  ;;  %v106_v25 = vsub.f32 %v409_v4, %v60_v56  ;;  %v132_v56 = vand.u32 2147483647, %v116_v45 }
  0x84   :  { %v124_v31 = vand.u32 2147483647, %v108_v24  ;;  %v122_v32 = vand.u32 2147483647, %v106_v25 }
  0x86   :  { %v154_v36 = vsel %vm137_vm3, %v124_v31, 0.0  ;;  %v153_v5 = vsel %vm137_vm3, %v122_v32, 0.0 }
  0x87   :  { %v155_v41 = vadd.f32 %v154_v36, %v153_v5 }
  0x89   :  { %v72_v19 = vpop.permute.xlu1 %71  ;;  %v70_v20 = vpop.permute.xlu0 %69 }
  0x8a   :  { %v111_v27 = vsub.f32 %v418_v7, %v70_v20  ;;  %v112_v3 = vsub.f32 %v416_v6, %v72_v19  ;;  %v126_v7 = vand.u32 2147483647, %v110_v0  ;;  %v86_v6 = vpop.permute.xlu2 %85 }
  0x8b   :  { %v119_v52 = vsub.f32 %v438_v14, %v86_v6 }
  0x8c   :  { %v127_v4 = vand.u32 2147483647, %v111_v27  ;;  %v128_v39 = vand.u32 2147483647, %v112_v3  ;;  %v156_v42 = vsel %vm137_vm3, %v126_v7, 0.0 }
  0x8d   :  { %v157_v53 = vadd.f32 %v156_v42, %v155_v41  ;;  %v135_v61 = vand.u32 2147483647, %v119_v52 }
  0x8e   :  { %v143_v8 = vsel %vm137_vm3, %v127_v4, 0.0 }
  0x8f   :  { %v144_v47 = vadd.f32 %v143_v8, %v142_v40  ;;  %v151_v17 = vsel %vm137_vm3, %v135_v61, 0.0 }
  0x91   :  { %v78_v46 = vpop.permute.xlu1 %77  ;;  %v76_v33 = vpop.permute.xlu0 %75  ;;  %v146_v58 = vadd.f32 %v145_v48, %v144_v47 }
  0x92   :  { %v115_v30 = vsub.f32 %v425_v9, %v78_v46  ;;  %v114_v37 = vsub.f32 %v427_v10, %v76_v33  ;;  %v158_v10 = vsel %vm137_vm3, %v128_v39, 0.0 }
  0x93   :  { %v159_v57 = vadd.f32 %v158_v10, %v157_v53 }
  0x94   :  { %v131_v43 = vand.u32 2147483647, %v115_v30  ;;  %v130_v44 = vand.u32 2147483647, %v114_v37 }
  0x96   :  { %v147_v54 = vsel %vm137_vm3, %v131_v43, 0.0  ;;  %v160_v55 = vsel %vm137_vm3, %v130_v44, 0.0 }
  0x97   :  { %v148_v62 = vadd.f32 %v147_v54, %v146_v58  ;;  %v161_v63 = vadd.f32 %v160_v55, %v159_v57 }
  0x99   :  { %v84_v49 = vpop.permute.xlu1 %83  ;;  %v82_v9 = vpop.permute.xlu0 %81 }
  0x9a   :  { %v118_v50 = vsub.f32 %v434_v12, %v84_v49  ;;  %v117_v51 = vsub.f32 %v436_v13, %v82_v9  ;;  %v162_v12 = vsel %vm137_vm3, %v132_v56, 0.0 }
  0x9b   :  { %v163_v19 = vadd.f32 %v162_v12, %v161_v63 }
  0x9c   :  { %v133_v11 = vand.u32 2147483647, %v117_v51  ;;  %v134_v59 = vand.u32 2147483647, %v118_v50 }
  0x9e   :  { %v149_v60 = vsel %vm137_vm3, %v133_v11, 0.0  ;;  %v164_v14 = vsel %vm137_vm3, %v134_v59, 0.0 }
  0x9f   :  { %v150_v13 = vadd.f32 %v149_v60, %v148_v62  ;;  %v165_v21 = vadd.f32 %v164_v14, %v163_v19 }
  0xa1   :  { %v88_v16 = vpop.permute.xlu0 %87  ;;  %v152_v22 = vadd.f32 %v151_v17, %v150_v13 }
  0xa2   :  { %v120_v18 = vsub.f32 %v443_v15, %v88_v16 }
  0xa3   :  { %v168_v25 = vsel %vm137_vm3, %v152_v22, 0.0 }
  0xa4   :  { %v136_v20 = vand.u32 2147483647, %v120_v18 }
  0xa6   :  { %v166_v23 = vsel %vm137_vm3, %v136_v20, 0.0 }
  0xa7   :  { %v167_v24 = vadd.f32 %v166_v23, %v165_v21 }
  0xa9   :  { %v169_v26 = vsel %vm137_vm3, %v167_v24, 0.0 }
  0xaa   :  { %v170_v27 = vadd.f32 %v169_v26, %v168_v25 }
  0xac   :  { %171 = vadd.xlane.f32.xlu1 %v170_v27 }
  0xc4   :  { %v289_v28 = vpop.xlane.xlu2 %288 }
  0xc5   :  { %v290_v0 = vrot.slane %v289_v28, 4 }
  0xc7   :  { %v291_v1 = vadd.f32 %v290_v0, %v289_v28 }
  0xc9   :  { %v292_v29 = vrot.slane %v291_v1, 2 }
  0xcb   :  { %v293_v2 = vadd.f32 %v292_v29, %v291_v1 }
  0xcd   :  { %v294_v3 = vrot.slane %v293_v2, 1 }
  0xcf   :  { %v295_v35 = vadd.f32 %v294_v3, %v293_v2 }
 0x11f   :  { %v172_v31 = vpop.xlane.xlu1 %171 }
 0x120   :  { %v173_v32 = vrot.slane %v172_v31, 4 }
 0x122   :  { %v174_v15 = vadd.f32 %v173_v32, %v172_v31 }
 0x124   :  { %v175_v46 = vrot.slane %v174_v15, 2 }
 0x126   :  { %v176_v33 = vadd.f32 %v175_v46, %v174_v15 }
 0x128   :  { %v177_v4 = vrot.slane %v176_v33, 1 }
 0x12a   :  { %v178_v34 = vadd.f32 %v177_v4, %v176_v33 }
 0x12c   :  { %319 = vpush %v178_v34 }
 0x12d   :  { %321 = vpush %v295_v35 }
 0x15d   :  { %s320_s0 = spop %319 }
 0x15e   :  { %s297_s16 = smul.f32 0.00052083336, %s320_s0  ;;  %s322_s17 = spop %321 }
 0x15f   :  { %s298_s18 = smul.f32 0.00052083336, %s322_s17 }
 0x161   :  { %s299_s22 = sadd.f32 %s298_s18, %s297_s16 }
 0x163   :  { %v300_v7 = vstv %s299_s22 }
 0x164   :  { %301 = vst [vmem:[#allocation5] sm:$0xff] %v300_v7 }
 0x165   :  { %312 = dma.vmem_to_hbm [thread:$0]  %s308_s15, 128, %s310_s21, [#allocation4]  }
 0x166   :  { %378 = dma.done.wait [#allocation4], 128  }
 0x167   :  { %379 = vsyncadd [#allocation4], 4294967168 }
 0x168   :  { %317 = vsyncpa [#allocation3], 1 }
 0x169   :  { %318 = vsyncpa [#allocation4], 1 }

</bundles_post_ra>
